<compile_context>
chip_gen: v7x
topology: tpu7x:2x2x1
jax: 0.10.0
libtpu: 0.0.40
codegen_flags: <defaults>
</compile_context>

<pallas_src>
import functools
import math

import jax
import jax.numpy as jnp
from jax import lax
from jax.experimental import pallas as pl
from jax.experimental.pallas import tpu as pltpu


# --------------------------------------------------------------------------
# helpers
# --------------------------------------------------------------------------
def _round_up(x, m):
    return (x + m - 1) // m * m


# --------------------------------------------------------------------------
# tiled linear: out = x @ w, bf16 operands, f32 accumulation
# grid = (M tiles, Dout tiles), weight block resident across M steps
# --------------------------------------------------------------------------
def _linear_kernel(x_ref, w_ref, o_ref):
    o_ref[...] = jnp.dot(
        x_ref[...], w_ref[...], preferred_element_type=jnp.float32
    ).astype(o_ref.dtype)


def _linear(x, w, *, out_dtype, tile_m=256, tile_n=1024):
    M, K = x.shape
    K2, Dout = w.shape
    assert K == K2

    # M tile: multiple of 8 and (when M allows) at least 2 grid steps so the
    # "parallel" axis can be split across v7x's two TensorCores.
    m8 = _round_up(M, 8)
    tm = min(tile_m, m8)
    if m8 // tm < 2 and m8 >= 16:
        tm = max(8, (m8 // 2) // 8 * 8)
    Mp = _round_up(M, tm)

    # Dout tile: largest multiple-of-128 divisor <= tile_n, else full Dout.
    tn = Dout
    cand = (min(tile_n, Dout) // 128) * 128
    while cand >= 128:
        if Dout % cand == 0:
            tn = cand
            break
        cand -= 128

    xp = x if Mp == M else jnp.pad(x, ((0, Mp - M), (0, 0)))

    in_item = jnp.dtype(x.dtype).itemsize
    out_item = jnp.dtype(out_dtype).itemsize
    vmem_bytes = (2 * in_item * (tm * K + K * tn)
                  + 2 * out_item * tm * tn + (8 << 20))
    vmem_limit = int(min(max(vmem_bytes, 32 << 20), 64 << 20))

    out = pl.pallas_call(
        _linear_kernel,
        out_shape=jax.ShapeDtypeStruct((Mp, Dout), out_dtype),
        grid_spec=pltpu.PrefetchScalarGridSpec(
            num_scalar_prefetch=0,
            grid=(Mp // tm, Dout // tn),
            in_specs=[
                pl.BlockSpec((tm, K), lambda i, j: (i, 0)),
                pl.BlockSpec((K, tn), lambda i, j: (0, j)),  # resident weight
            ],
            out_specs=pl.BlockSpec((tm, tn), lambda i, j: (i, j)),
        ),
        compiler_params=pltpu.CompilerParams(
            dimension_semantics=("parallel", "parallel"),
            vmem_limit_bytes=vmem_limit),
        cost_estimate=pl.CostEstimate(
            flops=2 * Mp * K * Dout,
            transcendentals=0,
            bytes_accessed=(Mp * K + K * Dout) * in_item
            + Mp * Dout * out_item),
    )(xp, w)
    return out if Mp == M else out[:M]


# --------------------------------------------------------------------------
# flash attention (online softmax), grid = (B*heads, q_tiles, kv_tiles)
# blocks squeezed to 2-D (tile, head_dim); bf16 MXU, f32 running stats
# --------------------------------------------------------------------------
def _flash_attn_kernel(q_ref, k_ref, v_ref, o_ref, m_sc, l_sc, acc_sc, *,
                       scale, block_k, n_valid):
    kv = pl.program_id(2)

    @pl.when(kv == 0)
    def _():
        m_sc[...] = jnp.full_like(m_sc, -jnp.inf)
        l_sc[...] = jnp.zeros_like(l_sc)
        acc_sc[...] = jnp.zeros_like(acc_sc)

    # Fold the softmax scale into q (tq*hd multiplies instead of tq*tk).
    qs = q_ref[...] * scale                                   # bf16 (tq, hd)
    s = lax.dot_general(qs, k_ref[...], (((1,), (1,)), ((), ())),
                        preferred_element_type=jnp.float32)   # (tq, tk) f32

    if n_valid is not None:  # key-padding mask (traced only if padding exists)
        col = kv * block_k + lax.broadcasted_iota(jnp.int32, s.shape, 1)
        s = jnp.where(col < n_valid, s, -jnp.inf)

    m_prev = m_sc[...]                                        # (tq, 1)
    m_new = jnp.maximum(m_prev, s.max(axis=-1, keepdims=True))
    alpha = jnp.exp(m_prev - m_new)
    p = jnp.exp(s - m_new)                                    # (tq, tk) f32

    l_sc[...] = alpha * l_sc[...] + p.sum(axis=-1, keepdims=True)
    acc_sc[...] = alpha * acc_sc[...] + jnp.dot(
        p.astype(v_ref.dtype), v_ref[...],
        preferred_element_type=jnp.float32)                   # (tq, hd) f32
    m_sc[...] = m_new

    @pl.when(kv == pl.num_programs(2) - 1)
    def _():
        inv_l = pl.reciprocal(l_sc[...], approx=True)         # EUP slot
        o_ref[...] = (acc_sc[...] * inv_l).astype(o_ref.dtype)


def _flash_attention(q, k, v, *, scale, tile=256):
    BH, N, hd = q.shape
    t = min(tile, _round_up(N, 8))
    Np = _round_up(N, t)
    if Np != N:
        pad = ((0, 0), (0, Np - N), (0, 0))
        q, k, v = jnp.pad(q, pad), jnp.pad(k, pad), jnp.pad(v, pad)
    n_valid = N if Np != N else None

    kernel = functools.partial(_flash_attn_kernel, scale=scale,
                               block_k=t, n_valid=n_valid)
    itemsize = jnp.dtype(q.dtype).itemsize
    out = pl.pallas_call(
        kernel,
        out_shape=jax.ShapeDtypeStruct((BH, Np, hd), q.dtype),
        grid_spec=pltpu.PrefetchScalarGridSpec(
            num_scalar_prefetch=0,
            grid=(BH, Np // t, Np // t),
            in_specs=[
                pl.BlockSpec((None, t, hd), lambda b, qi, ki: (b, qi, 0)),
                pl.BlockSpec((None, t, hd), lambda b, qi, ki: (b, ki, 0)),
                pl.BlockSpec((None, t, hd), lambda b, qi, ki: (b, ki, 0)),
            ],
            out_specs=pl.BlockSpec((None, t, hd),
                                   lambda b, qi, ki: (b, qi, 0)),
            scratch_shapes=[
                pltpu.VMEM((t, 1), jnp.float32),   # running max
                pltpu.VMEM((t, 1), jnp.float32),   # running denominator
                pltpu.VMEM((t, hd), jnp.float32),  # output accumulator
            ],
        ),
        compiler_params=pltpu.CompilerParams(
            dimension_semantics=("parallel", "parallel", "arbitrary")),
        cost_estimate=pl.CostEstimate(
            flops=4 * BH * Np * Np * hd,
            transcendentals=BH * Np * Np,
            bytes_accessed=4 * BH * Np * hd * itemsize),
    )(q, k, v)
    return out if Np == N else out[:, :N]


# --------------------------------------------------------------------------
# module wrapper
# --------------------------------------------------------------------------
class SelfAttention:
    """JAX/Pallas port of the PyTorch SelfAttention module (vanv2.py)."""

    def __init__(self, dim, head_dim=32, num_heads=None, qkv_bias=False,
                 proj_bias=False, key=None):
        if key is None:
            key = jax.random.PRNGKey(0)
        self.dim = dim
        self.head_dim = head_dim
        self.scale = head_dim ** (-0.5)
        self.num_heads = num_heads if num_heads else dim // head_dim
        if self.num_heads == 0:
            self.num_heads = 1
        self.attention_dim = self.num_heads * self.head_dim

        kq, kp, kbq, kbp = jax.random.split(key, 4)
        # nn.Linear default init: U(-1/sqrt(fan_in), 1/sqrt(fan_in)).
        # Weights stored (in_features, out_features) in bf16 (MXU fast path).
        lim_qkv = 1.0 / math.sqrt(dim)
        self.w_qkv = jax.random.uniform(
            kq, (dim, 3 * self.attention_dim), minval=-lim_qkv,
            maxval=lim_qkv, dtype=jnp.float32).astype(jnp.bfloat16)
        self.b_qkv = (jax.random.uniform(
            kbq, (3 * self.attention_dim,), minval=-lim_qkv, maxval=lim_qkv,
            dtype=jnp.float32) if qkv_bias else None)

        lim_p = 1.0 / math.sqrt(self.attention_dim)
        self.w_proj = jax.random.uniform(
            kp, (self.attention_dim, dim), minval=-lim_p, maxval=lim_p,
            dtype=jnp.float32).astype(jnp.bfloat16)
        self.b_proj = (jax.random.uniform(
            kbp, (dim,), minval=-lim_p, maxval=lim_p,
            dtype=jnp.float32) if proj_bias else None)

    def __call__(self, x):
        # x: (B, H, W, C) channels-last (the PyTorch forward's leading permute
        # is discarded). Returns (B, dim, H, W).
        B, H, W, C = x.shape
        N = H * W
        nh, hd, A = self.num_heads, self.head_dim, self.attention_dim
        M = B * N

        x2 = x.reshape(M, C).astype(jnp.bfloat16)

        # --- qkv projection (bf16 MXU, f32 accumulation, bf16 output) -------
        qkv = _linear(x2, self.w_qkv, out_dtype=jnp.bfloat16)   # (M, 3A)
        if self.b_qkv is not None:
            qkv = (qkv.astype(jnp.float32) + self.b_qkv).astype(jnp.bfloat16)

        qkv = qkv.reshape(B, N, 3, nh, hd)
        qkv = jnp.transpose(qkv, (2, 0, 3, 1, 4))               # (3,B,nh,N,hd)
        q = qkv[0].reshape(B * nh, N, hd)
        k = qkv[1].reshape(B * nh, N, hd)
        v = qkv[2].reshape(B * nh, N, hd)

        # --- attention (Pallas flash attention) ------------------------------
        o = _flash_attention(q, k, v, scale=self.scale)         # (B*nh,N,hd)
        o = o.reshape(B, nh, N, hd)
        o = jnp.transpose(o, (0, 2, 1, 3)).reshape(M, A)        # (M, A) bf16

        # --- output projection (bf16 MXU, f32 output) ------------------------
        y = _linear(o, self.w_proj, out_dtype=jnp.float32)      # (M, dim)
        if self.b_proj is not None:
            y = y + self.b_proj

        y = y.reshape(B, H, W, self.dim)
        return jnp.transpose(y, (0, 3, 1, 2))                   # (B,dim,H,W)


# --------------------------------------------------------------------------
# pure-JAX reference (mirrors the kernel's bf16-operand / f32-accum numerics)
# --------------------------------------------------------------------------
def _reference(x, mod):
    B, H, W, C = x.shape
    N = H * W
    nh, hd, A = mod.num_heads, mod.head_dim, mod.attention_dim
    f32 = jnp.float32

    x2 = x.reshape(B, N, C).astype(jnp.bfloat16)
    qkv = jnp.einsum('bnc,co->bno', x2, mod.w_qkv, preferred_element_type=f32)
    if mod.b_qkv is not None:
        qkv = qkv + mod.b_qkv
    qkv = qkv.astype(jnp.bfloat16).reshape(B, N, 3, nh, hd)
    qkv = jnp.transpose(qkv, (2, 0, 3, 1, 4))
    q, k, v = qkv[0], qkv[1], qkv[2]

    s = jnp.einsum('bhqd,bhkd->bhqk', q * mod.scale, k,
                   preferred_element_type=f32)
    m = s.max(axis=-1, keepdims=True)
    p = jnp.exp(s - m)
    num = jnp.einsum('bhqk,bhkd->bhqd', p.astype(jnp.bfloat16), v,
                     preferred_element_type=f32)
    o = (num / p.sum(axis=-1, keepdims=True)).astype(jnp.bfloat16)
    o = jnp.transpose(o, (0, 2, 1, 3)).reshape(B, N, A)

    y = jnp.einsum('bna,ao->bno', o, mod.w_proj, preferred_element_type=f32)
    if mod.b_proj is not None:
        y = y + mod.b_proj
    y = y.reshape(B, H, W, mod.dim)
    return jnp.transpose(y, (0, 3, 1, 2))


if __name__ == "__main__":
    key = jax.random.PRNGKey(0)
    k_in, k_w = jax.random.split(key)

    # B=2, H=16, W=32 -> N=512 (2 q-tiles x 2 kv-tiles of 256, exercises the
    # online-softmax accumulation), dim=64, head_dim=32 -> num_heads=2.
    B, Hs, Ws, dim = 2, 16, 32, 64
    x = jax.random.normal(k_in, (B, Hs, Ws, dim), dtype=jnp.float32)

    module = SelfAttention(dim=dim, head_dim=32, key=k_w)

    out = jax.block_until_ready(module(x))
    assert out.shape == (B, dim, Hs, Ws), out.shape

    ref = _reference(x, module)
    max_err = float(jnp.max(jnp.abs(out - ref)))
    assert jnp.allclose(out, ref, atol=2e-2, rtol=2e-2), (
        f"mismatch vs reference, max abs err = {max_err}")

    print("KERNEL_OK")
</pallas_src>

<mosaic_0001>
module attributes {stable_mosaic.version = 11 : i64} {
  func.func @_linear_kernel(%arg0: i32, %arg1: i32, %arg2: memref<256x64xbf16, #tpu.memory_space<vmem>>, %arg3: memref<64x192xbf16, #tpu.memory_space<vmem>>, %arg4: memref<256x192xbf16, #tpu.memory_space<vmem>>) attributes {dimension_semantics = [#tpu.dimension_semantics<parallel>, #tpu.dimension_semantics<parallel>], iteration_bounds = array<i64: 4, 1>, scalar_prefetch = 0 : i64, scratch_operands = 0 : i64, tpu.core_type = #tpu.core_type<tc>, window_params = [{transform_indices = @transform_0, window_bounds = array<i64: 256, 64>}, {transform_indices = @transform_1, window_bounds = array<i64: 64, 192>}, {transform_indices = @transform_2, window_bounds = array<i64: 256, 192>}]} {
    %c0 = arith.constant 0 : index
    %c0_0 = arith.constant 0 : index
    %0 = vector.load %arg2[%c0, %c0_0] : memref<256x64xbf16, #tpu.memory_space<vmem>>, vector<256x64xbf16>
    %c0_1 = arith.constant 0 : index
    %c0_2 = arith.constant 0 : index
    %1 = vector.load %arg3[%c0_1, %c0_2] : memref<64x192xbf16, #tpu.memory_space<vmem>>, vector<64x192xbf16>
    %cst = arith.constant dense<0.000000e+00> : vector<256x192xf32>
    %2 = tpu.matmul %0, %1, %cst {dimension_numbers = #tpu.dot_dimension_numbers<[1], [0], [0], [1], [0, 0, 1, 1], [], []>} : vector<256x64xbf16>, vector<64x192xbf16>, vector<256x192xf32> -> vector<256x192xf32>
    %3 = arith.truncf %2 : vector<256x192xf32> to vector<256x192xbf16>
    %c0_3 = arith.constant 0 : index
    %c0_4 = arith.constant 0 : index
    %4 = vector.load %arg4[%c0_3, %c0_4] : memref<256x192xbf16, #tpu.memory_space<vmem>>, vector<256x192xbf16>
    tpu.vector_store %arg4[%c0_3, %c0_4], %3 {strides = array<i32>} : memref<256x192xbf16, #tpu.memory_space<vmem>>, vector<256x192xbf16>,
    return
  }
  func.func @transform_0(%arg0: i32, %arg1: i32) -> (i32, i32) {
    %c0_i32 = arith.constant 0 : i32
    %c0_i32_0 = arith.constant 0 : i32
    return %arg0, %c0_i32 : i32, i32
  }
  func.func @transform_1(%arg0: i32, %arg1: i32) -> (i32, i32) {
    %c0_i32 = arith.constant 0 : i32
    %c0_i32_0 = arith.constant 0 : i32
    return %c0_i32, %arg1 : i32, i32
  }
  func.func @transform_2(%arg0: i32, %arg1: i32) -> (i32, i32) {
    %c0_i32 = arith.constant 0 : i32
    return %arg0, %arg1 : i32, i32
  }
}

</mosaic_0001>

<bundles_post_ra>
// kernel: tpu_custom_call.1
= control target key start
LH: loop header
LB: loop body
LE: loop exit
PB: predicated region body
PF: predicated region fallthrough
CT: control target
= control target key end

     0   :  { %s1142_s9 = smov 0   ;;  %s1144_s10 = smov 0   ;;  %s1355_s0 = inlined_call_operand.vmem [shape: bf16[1024,64], index: 0, kind: input, shape index: {}]   ;;  %s1356_s1 = inlined_call_operand.vmem [shape: bf16[64,192], index: 1, kind: input, shape index: {}]   ;;  %s1357_s2 = inlined_call_operand.vmem [shape: bf16[1024,192], index: 2, kind: output, shape index: {}]  }
   0x1   :  { %s1146_s11 = smov 0  }
   0x2 LB: > { %s24_s12 = sadd.s32 1, %s1120_s10  ;;  %p928_p0 = scmp.ge.s32.totalorder %s1124_s11, 1  ;;  %s1124_s11 = sphi %s1146_s11, %s12_s11   ;;  %s1120_s10 = sphi %s1144_s10, %s1361_s10   ;;  %s1116_s9 = sphi %s1142_s9, %s1360_s9  }
   0x3   : > { %p26_p1 = scmp.ge.s32.totalorder %s24_s12, 4  ;;  %p138_p2 = scmp.lt.s32.totalorder %s1124_s11, 5 }
   0x5   : > { %s1363_s12 = smov (%p26_p1, %s24_s12), 0  ;;  %p139_p3 = pnand %p928_p0, %p138_p2 }
   0x6   : > { %v1074_v0 = vld [vmem:[%s1356_s1 + $0x4] ss:$8 sps:$4 sm:$0xff] (!%p139_p3)   ;;  %s929_s15 = sshll.u32 (!%p139_p3), %s1116_s9, 5  ;;  %v1076_v1 = vld [vmem:[%s1356_s1] ss:$8 sps:$4 sm:$0xff] (!%p139_p3)   ;;  %v1126_v2 = vmov (!%p139_p3), 0  }
   0x7   : > { %142 = sbr.rel (%p139_p3) target bundleno = 298 (0x12a), region = 28  ;;  %436 = vmatprep.mubr.bf16.mxu0 (!%p139_p3), %v1126_v2  ;;  %516 = vmatprep.mubr.bf16.mxu1 (!%p139_p3), %v1126_v2  ;;  %p171_p4 = scmp.lt.s32.totalorder (!%p139_p3), %s929_s15, 127  ;;  %v1077_v3 = vld [vmem:[%s1356_s1 + $0x14] ss:$8 sps:$4 sm:$0xff] (!%p139_p3)   ;;  %v1079_v4 = vld [vmem:[%s1356_s1 + $0x10] ss:$8 sps:$4 sm:$0xff] (!%p139_p3)  }
   0x8   : > { %404 = vmatprep.subr.bf16.mxu0 (!%p139_p3), %v1074_v0  ;;  %1041 = vmatprep.subr.bf16.mxu1 (!%p139_p3), %v1074_v0  ;;  %v1080_v5 = vld [vmem:[%s1356_s1 + $0x24] ss:$8 sps:$4 sm:$0xff] (!%p139_p3)   ;;  %v1082_v6 = vld [vmem:[%s1356_s1 + $0x20] ss:$8 sps:$4 sm:$0xff] (!%p139_p3)   ;;  %v1083_v7 = vld [vmem:[%s1356_s1 + $0x34] ss:$8 sps:$4 sm:$0xff] (!%p139_p3)  }
   0x9   : > { %405 = vmatpush1.bf16.msra.mxu0 (!%p139_p3), %v1076_v1  ;;  %1045 = vmatpush1.bf16.msra.mxu1 (!%p139_p3), %v1076_v1  ;;  %v1085_v8 = vld [vmem:[%s1356_s1 + $0x30] ss:$8 sps:$4 sm:$0xff] (!%p139_p3)   ;;  %vm355_vm0 = vcmask (!%p139_p3), 523264   ;;  %vm789_vm1 = vcmask (!%p139_p3), 1043456   ;;  %vm790_vm2 = vcmask (!%p139_p3), 523268  }
   0xa   : > { %406 = vmatprep.subr.bf16.mxu0 (!%p139_p3), %v1077_v3  ;;  %1042 = vmatprep.subr.bf16.mxu1 (!%p139_p3), %v1077_v3  ;;  %vm1246_vm3 = vmor (!%p139_p3), %vm790_vm2, %vm789_vm1 }
   0xd   : > { %407 = vmatpush1.bf16.msra.mxu0 (!%p139_p3), %v1079_v4  ;;  %1046 = vmatpush1.bf16.msra.mxu1 (!%p139_p3), %v1079_v4 }
   0xe   : > { %s1365_s15 = smov (!%p171_p4, %s929_s15), 127  ;;  %408 = vmatprep.subr.bf16.mxu0 %v1080_v5  ;;  %1043 = vmatprep.subr.bf16.mxu1 %v1080_v5 }
   0xf   : > { %s930_s24 = sshll.u32 %s1365_s15, 2  ;;  %s1008_s6 = sshll.u32 %s1365_s15, 3 }
  0x10   : > { %s1183_s27 = scalar_lea.vmem %s1355_s0, %s930_s24  ;;  %s1244_s9 = scalar_lea.vmem %s1357_s2, %s1008_s6 }
  0x11   : > { %409 = vmatpush1.bf16.msra.mxu0 %v1082_v6  ;;  %1047 = vmatpush1.bf16.msra.mxu1 %v1082_v6  ;;  %v1086_v9 = vld [vmem:[%s1183_s27] sm:$0xff]   ;;  %v1088_v11 = vld [vmem:[%s1183_s27 + $0x8] sm:$0xff]   ;;  %v1090_v13 = vld [vmem:[%s1183_s27 + $0x10] sm:$0xff]  }
  0x12   : > { %410 = vmatprep.subr.bf16.mxu0 %v1083_v7  ;;  %1044 = vmatprep.subr.bf16.mxu1 %v1083_v7  ;;  %v1087_v10 = vld [vmem:[%s1183_s27 + $0x40] sm:$0xff]   ;;  %v1089_v12 = vld [vmem:[%s1183_s27 + $0x48] sm:$0xff]   ;;  %v1091_v14 = vld [vmem:[%s1183_s27 + $0x50] sm:$0xff]  }
  0x13   : > { %v1092_v15 = vld [vmem:[%s1183_s27 + $0x18] sm:$0xff]   ;;  %v1094_v17 = vld [vmem:[%s1183_s27 + $0x20] sm:$0xff]   ;;  %v1096_v19 = vld [vmem:[%s1183_s27 + $0x28] sm:$0xff]  }
  0x14   : > { %v1093_v16 = vld [vmem:[%s1183_s27 + $0x58] sm:$0xff]   ;;  %v1095_v18 = vld [vmem:[%s1183_s27 + $0x60] sm:$0xff]   ;;  %v1097_v20 = vld [vmem:[%s1183_s27 + $0x68] sm:$0xff]  }
  0x15   : > { %411 = vmatpush1.bf16.msra.mxu0 %v1085_v8  ;;  %1048 = vmatpush1.bf16.msra.mxu1 %v1085_v8  ;;  %v1098_v21 = vld [vmem:[%s1183_s27 + $0x30] sm:$0xff]   ;;  %v1100_v23 = vld [vmem:[%s1183_s27 + $0x38] sm:$0xff]  }
  0x16   : > { %v1099_v22 = vld [vmem:[%s1183_s27 + $0x70] sm:$0xff]   ;;  %v1101_v24 = vld [vmem:[%s1183_s27 + $0x78] sm:$0xff]  }
  0x18   : > { %958 = vmatmul.mubr.msk.bf16.vlgmr.msra.gmra.mrb[0].mxu0 %vm355_vm0, %v1086_v9  ;;  %966 = vmatmul.mubr.msk.bf16.vlgmr.msra.gmra.mrb[0].mxu1 %vm355_vm0, %v1087_v10 }
  0x19   : > { %446 = vmatprep.mubr.bf16.mxu0 %v1126_v2  ;;  %526 = vmatprep.mubr.bf16.mxu1 %v1126_v2 }
  0x20   : > { %959 = vmatmul.mubr.msk.bf16.gmra.mrb[4].mxu0 %vm355_vm0, %v1088_v11  ;;  %967 = vmatmul.mubr.msk.bf16.gmra.mrb[4].mxu1 %vm355_vm0, %v1089_v12 }
  0x21   : > { %456 = vmatprep.mubr.bf16.mxu0 %v1126_v2  ;;  %536 = vmatprep.mubr.bf16.mxu1 %v1126_v2 }
  0x28   : > { %960 = vmatmul.mubr.msk.bf16.gmra.mrb[8].mxu0 %vm355_vm0, %v1090_v13  ;;  %968 = vmatmul.mubr.msk.bf16.gmra.mrb[8].mxu1 %vm355_vm0, %v1091_v14 }
  0x29   : > { %466 = vmatprep.mubr.bf16.mxu0 %v1126_v2  ;;  %546 = vmatprep.mubr.bf16.mxu1 %v1126_v2 }
  0x30   : > { %961 = vmatmul.mubr.msk.bf16.gmra.mrb[12].mxu0 %vm355_vm0, %v1092_v15  ;;  %969 = vmatmul.mubr.msk.bf16.gmra.mrb[12].mxu1 %vm355_vm0, %v1093_v16 }
  0x31   : > { %476 = vmatprep.mubr.bf16.mxu0 %v1126_v2  ;;  %556 = vmatprep.mubr.bf16.mxu1 %v1126_v2 }
  0x38   : > { %962 = vmatmul.mubr.msk.bf16.gmra.mrb[16].mxu0 %vm355_vm0, %v1094_v17  ;;  %970 = vmatmul.mubr.msk.bf16.gmra.mrb[16].mxu1 %vm355_vm0, %v1095_v18 }
  0x39   : > { %486 = vmatprep.mubr.bf16.mxu0 %v1126_v2  ;;  %566 = vmatprep.mubr.bf16.mxu1 %v1126_v2 }
  0x40   : > { %963 = vmatmul.mubr.msk.bf16.gmra.mrb[20].mxu0 %vm355_vm0, %v1096_v19  ;;  %971 = vmatmul.mubr.msk.bf16.gmra.mrb[20].mxu1 %vm355_vm0, %v1097_v20 }
  0x41   : > { %496 = vmatprep.mubr.bf16.mxu0 %v1126_v2  ;;  %576 = vmatprep.mubr.bf16.mxu1 %v1126_v2 }
  0x48   : > { %964 = vmatmul.mubr.msk.bf16.gmra.mrb[24].mxu0 %vm355_vm0, %v1098_v21  ;;  %972 = vmatmul.mubr.msk.bf16.gmra.mrb[24].mxu1 %vm355_vm0, %v1099_v22 }
  0x49   : > { %506 = vmatprep.mubr.bf16.mxu0 %v1126_v2  ;;  %586 = vmatprep.mubr.bf16.mxu1 %v1126_v2 }
  0x50   : > { %965 = vmatmul.mubr.msk.bf16.gmra.mrb[28].mxu0 %vm355_vm0, %v1100_v23  ;;  %973 = vmatmul.mubr.msk.bf16.gmra.mrb[28].mxu1 %vm355_vm0, %v1101_v24 }
  0xeb   : > { %v438_v25 = vpop.f32.mrb[0].mxu0  ;;  %v518_v26 = vpop.f32.mrb[0].mxu1 }
  0xec   : > { %v440_v27 = vpop.f32.mrb[1].mxu0  ;;  %v520_v29 = vpop.f32.mrb[1].mxu1 }
  0xed   : > { %v1009_v30 = vpack.c.bf16 %v440_v27, %v438_v25  ;;  %v1025_v31 = vpack.c.bf16 %v520_v29, %v518_v26  ;;  %v442_v32 = vpop.f32.mrb[2].mxu0  ;;  %v522_v33 = vpop.f32.mrb[2].mxu1 }
  0xee   : > { %v444_v34 = vpop.f32.mrb[3].mxu0  ;;  %v524_v35 = vpop.f32.mrb[3].mxu1 }
  0xef   : > { %792 = vst.msk [vmem:[%s1244_s9] sm:$0xff] %vm1246_vm3, %v1009_v30  ;;  %808 = vst.msk [vmem:[%s1244_s9 + $0x80] sm:$0xff] %vm1246_vm3, %v1025_v31  ;;  %v1010_v36 = vpack.c.bf16 %v444_v34, %v442_v32  ;;  %v1026_v37 = vpack.c.bf16 %v524_v35, %v522_v33 }
  0xf1   : > { %793 = vst.msk [vmem:[%s1244_s9 + $0x8] sm:$0xff] %vm1246_vm3, %v1010_v36  ;;  %809 = vst.msk [vmem:[%s1244_s9 + $0x88] sm:$0xff] %vm1246_vm3, %v1026_v37 }
  0xf3   : > { %v448_v38 = vpop.f32.mrb[4].mxu0  ;;  %v528_v39 = vpop.f32.mrb[4].mxu1 }
  0xf4   : > { %v450_v40 = vpop.f32.mrb[5].mxu0  ;;  %v530_v41 = vpop.f32.mrb[5].mxu1 }
  0xf5   : > { %v1011_v42 = vpack.c.bf16 %v450_v40, %v448_v38  ;;  %v1027_v43 = vpack.c.bf16 %v530_v41, %v528_v39  ;;  %v452_v44 = vpop.f32.mrb[6].mxu0  ;;  %v532_v45 = vpop.f32.mrb[6].mxu1 }
  0xf6   : > { %v454_v46 = vpop.f32.mrb[7].mxu0  ;;  %v534_v47 = vpop.f32.mrb[7].mxu1 }
  0xf7   : > { %794 = vst.msk [vmem:[%s1244_s9 + $0x10] sm:$0xff] %vm1246_vm3, %v1011_v42  ;;  %810 = vst.msk [vmem:[%s1244_s9 + $0x90] sm:$0xff] %vm1246_vm3, %v1027_v43  ;;  %v1012_v48 = vpack.c.bf16 %v454_v46, %v452_v44  ;;  %v1028_v49 = vpack.c.bf16 %v534_v47, %v532_v45 }
  0xf9   : > { %795 = vst.msk [vmem:[%s1244_s9 + $0x18] sm:$0xff] %vm1246_vm3, %v1012_v48  ;;  %811 = vst.msk [vmem:[%s1244_s9 + $0x98] sm:$0xff] %vm1246_vm3, %v1028_v49 }
  0xfb   : > { %v458_v50 = vpop.f32.mrb[8].mxu0  ;;  %v538_v51 = vpop.f32.mrb[8].mxu1 }
  0xfc   : > { %v460_v52 = vpop.f32.mrb[9].mxu0  ;;  %v540_v53 = vpop.f32.mrb[9].mxu1 }
  0xfd   : > { %v1013_v54 = vpack.c.bf16 %v460_v52, %v458_v50  ;;  %v1029_v55 = vpack.c.bf16 %v540_v53, %v538_v51  ;;  %v462_v56 = vpop.f32.mrb[10].mxu0  ;;  %v542_v57 = vpop.f32.mrb[10].mxu1 }
  0xfe   : > { %v464_v58 = vpop.f32.mrb[11].mxu0  ;;  %v544_v59 = vpop.f32.mrb[11].mxu1 }
  0xff   : > { %796 = vst.msk [vmem:[%s1244_s9 + $0x20] sm:$0xff] %vm1246_vm3, %v1013_v54  ;;  %812 = vst.msk [vmem:[%s1244_s9 + $0xa0] sm:$0xff] %vm1246_vm3, %v1029_v55  ;;  %v1014_v60 = vpack.c.bf16 %v464_v58, %v462_v56  ;;  %v1030_v61 = vpack.c.bf16 %v544_v59, %v542_v57 }
 0x101   : > { %797 = vst.msk [vmem:[%s1244_s9 + $0x28] sm:$0xff] %vm1246_vm3, %v1014_v60  ;;  %813 = vst.msk [vmem:[%s1244_s9 + $0xa8] sm:$0xff] %vm1246_vm3, %v1030_v61 }
 0x103   : > { %v468_v62 = vpop.f32.mrb[12].mxu0  ;;  %v548_v63 = vpop.f32.mrb[12].mxu1 }
 0x104   : > { %v470_v0 = vpop.f32.mrb[13].mxu0  ;;  %v550_v1 = vpop.f32.mrb[13].mxu1 }
 0x105   : > { %v1015_v2 = vpack.c.bf16 %v470_v0, %v468_v62  ;;  %v1031_v3 = vpack.c.bf16 %v550_v1, %v548_v63  ;;  %v472_v4 = vpop.f32.mrb[14].mxu0  ;;  %v552_v5 = vpop.f32.mrb[14].mxu1 }
 0x106   : > { %v474_v6 = vpop.f32.mrb[15].mxu0  ;;  %v554_v7 = vpop.f32.mrb[15].mxu1 }
 0x107   : > { %798 = vst.msk [vmem:[%s1244_s9 + $0x30] sm:$0xff] %vm1246_vm3, %v1015_v2  ;;  %814 = vst.msk [vmem:[%s1244_s9 + $0xb0] sm:$0xff] %vm1246_vm3, %v1031_v3  ;;  %v1016_v8 = vpack.c.bf16 %v474_v6, %v472_v4  ;;  %v1032_v9 = vpack.c.bf16 %v554_v7, %v552_v5 }
 0x109   : > { %799 = vst.msk [vmem:[%s1244_s9 + $0x38] sm:$0xff] %vm1246_vm3, %v1016_v8  ;;  %815 = vst.msk [vmem:[%s1244_s9 + $0xb8] sm:$0xff] %vm1246_vm3, %v1032_v9 }
 0x10b   : > { %v478_v10 = vpop.f32.mrb[16].mxu0  ;;  %v558_v11 = vpop.f32.mrb[16].mxu1 }
 0x10c   : > { %v480_v12 = vpop.f32.mrb[17].mxu0  ;;  %v560_v13 = vpop.f32.mrb[17].mxu1 }
 0x10d   : > { %v1017_v14 = vpack.c.bf16 %v480_v12, %v478_v10  ;;  %v1033_v15 = vpack.c.bf16 %v560_v13, %v558_v11  ;;  %v482_v16 = vpop.f32.mrb[18].mxu0  ;;  %v562_v17 = vpop.f32.mrb[18].mxu1 }
 0x10e   : > { %v484_v18 = vpop.f32.mrb[19].mxu0  ;;  %v564_v19 = vpop.f32.mrb[19].mxu1 }
 0x10f   : > { %800 = vst.msk [vmem:[%s1244_s9 + $0x40] sm:$0xff] %vm1246_vm3, %v1017_v14  ;;  %816 = vst.msk [vmem:[%s1244_s9 + $0xc0] sm:$0xff] %vm1246_vm3, %v1033_v15  ;;  %v1018_v20 = vpack.c.bf16 %v484_v18, %v482_v16  ;;  %v1034_v21 = vpack.c.bf16 %v564_v19, %v562_v17 }
 0x111   : > { %801 = vst.msk [vmem:[%s1244_s9 + $0x48] sm:$0xff] %vm1246_vm3, %v1018_v20  ;;  %817 = vst.msk [vmem:[%s1244_s9 + $0xc8] sm:$0xff] %vm1246_vm3, %v1034_v21 }
 0x113   : > { %v488_v22 = vpop.f32.mrb[20].mxu0  ;;  %v568_v23 = vpop.f32.mrb[20].mxu1 }
 0x114   : > { %v490_v24 = vpop.f32.mrb[21].mxu0  ;;  %v570_v25 = vpop.f32.mrb[21].mxu1 }
 0x115   : > { %v1019_v26 = vpack.c.bf16 %v490_v24, %v488_v22  ;;  %v1035_v27 = vpack.c.bf16 %v570_v25, %v568_v23  ;;  %v492_v29 = vpop.f32.mrb[22].mxu0  ;;  %v572_v30 = vpop.f32.mrb[22].mxu1 }
 0x116   : > { %v494_v31 = vpop.f32.mrb[23].mxu0  ;;  %v574_v32 = vpop.f32.mrb[23].mxu1 }
 0x117   : > { %802 = vst.msk [vmem:[%s1244_s9 + $0x50] sm:$0xff] %vm1246_vm3, %v1019_v26  ;;  %818 = vst.msk [vmem:[%s1244_s9 + $0xd0] sm:$0xff] %vm1246_vm3, %v1035_v27  ;;  %v1020_v33 = vpack.c.bf16 %v494_v31, %v492_v29  ;;  %v1036_v34 = vpack.c.bf16 %v574_v32, %v572_v30 }
 0x119   : > { %803 = vst.msk [vmem:[%s1244_s9 + $0x58] sm:$0xff] %vm1246_vm3, %v1020_v33  ;;  %819 = vst.msk [vmem:[%s1244_s9 + $0xd8] sm:$0xff] %vm1246_vm3, %v1036_v34 }
 0x11b   : > { %v498_v35 = vpop.f32.mrb[24].mxu0  ;;  %v578_v36 = vpop.f32.mrb[24].mxu1 }
 0x11c   : > { %v500_v37 = vpop.f32.mrb[25].mxu0  ;;  %v580_v38 = vpop.f32.mrb[25].mxu1 }
 0x11d   : > { %v1021_v39 = vpack.c.bf16 %v500_v37, %v498_v35  ;;  %v1037_v40 = vpack.c.bf16 %v580_v38, %v578_v36  ;;  %v502_v41 = vpop.f32.mrb[26].mxu0  ;;  %v582_v42 = vpop.f32.mrb[26].mxu1 }
 0x11e   : > { %v504_v43 = vpop.f32.mrb[27].mxu0  ;;  %v584_v44 = vpop.f32.mrb[27].mxu1 }
 0x11f   : > { %804 = vst.msk [vmem:[%s1244_s9 + $0x60] sm:$0xff] %vm1246_vm3, %v1021_v39  ;;  %820 = vst.msk [vmem:[%s1244_s9 + $0xe0] sm:$0xff] %vm1246_vm3, %v1037_v40  ;;  %v1022_v45 = vpack.c.bf16 %v504_v43, %v502_v41  ;;  %v1038_v46 = vpack.c.bf16 %v584_v44, %v582_v42 }
 0x121   : > { %805 = vst.msk [vmem:[%s1244_s9 + $0x68] sm:$0xff] %vm1246_vm3, %v1022_v45  ;;  %821 = vst.msk [vmem:[%s1244_s9 + $0xe8] sm:$0xff] %vm1246_vm3, %v1038_v46 }
 0x123   : > { %v508_v47 = vpop.f32.mrb[28].mxu0  ;;  %v588_v48 = vpop.f32.mrb[28].mxu1 }
 0x124   : > { %v510_v49 = vpop.f32.mrb[29].mxu0  ;;  %v590_v50 = vpop.f32.mrb[29].mxu1 }
 0x125   : > { %v1023_v51 = vpack.c.bf16 %v510_v49, %v508_v47  ;;  %v1039_v52 = vpack.c.bf16 %v590_v50, %v588_v48  ;;  %v512_v53 = vpop.f32.mrb[30].mxu0  ;;  %v592_v54 = vpop.f32.mrb[30].mxu1 }
 0x126   : > { %v514_v55 = vpop.f32.mrb[31].mxu0  ;;  %v594_v56 = vpop.f32.mrb[31].mxu1 }
 0x127   : > { %806 = vst.msk [vmem:[%s1244_s9 + $0x70] sm:$0xff] %vm1246_vm3, %v1023_v51  ;;  %822 = vst.msk [vmem:[%s1244_s9 + $0xf0] sm:$0xff] %vm1246_vm3, %v1039_v52  ;;  %v1024_v57 = vpack.c.bf16 %v514_v55, %v512_v53  ;;  %v1040_v58 = vpack.c.bf16 %v594_v56, %v592_v54 }
 0x129   : > { %807 = vst.msk [vmem:[%s1244_s9 + $0x78] sm:$0xff] %vm1246_vm3, %v1024_v57  ;;  %823 = vst.msk [vmem:[%s1244_s9 + $0xf8] sm:$0xff] %vm1246_vm3, %v1040_v58 }
 0x12a PF: > { %s12_s11 = sadd.s32 1, %s1124_s11   ;;  %s1360_s9 = smov %s1120_s10 }
 0x12b   : > { %p9_p5 = scmp.ge.s32.totalorder %s12_s11, 6   ;;  %s1361_s10 = smov %s1363_s12 }
 0x12d   :  { %11 = sbr.rel (!%p9_p5) target bundleno = 2 (0x2), region = 61 }

</bundles_post_ra>
